<compile_context>
chip_gen: v7x
topology: tpu7x:2x2x1
jax: 0.10.0
libtpu: 0.0.40
codegen_flags: <defaults>
</compile_context>

<pallas_src>
import math

import jax
import jax.numpy as jnp
from jax.experimental import pallas as pl
from jax.experimental.pallas import tpu as pltpu


TILE_B_MAX = 1024  # batch rows per grid step (multiple of 16)


def _round_up(x, m):
    return ((x + m - 1) // m) * m


def _choose_tile_b(b):
    """Batch rows per grid step.

    * multiple of 16 (bf16 sublane packing of the activation stream),
    * capped at TILE_B_MAX (big tiles amortize the ~0.35us per-step overhead),
    * for any non-tiny batch, split into >= 2 steps so the "parallel" batch
      axis can be sharded across both v7x TensorCores.
    `b` is a multiple of 8 here.
    """
    if b <= 16:
        return b
    return min(TILE_B_MAX, _round_up(pl.cdiv(b, 2), 16))


# ----------------------------------------------------------------------------- #
# Kernel: one batch tile -> (action tile, log_prob tile).
# ----------------------------------------------------------------------------- #
def _actor_kernel(x_ref, w0_ref, b0_ref, w1_ref, b1_ref,
                  wl_ref, bl_ref, ws_ref, bs_ref, eps_ref,
                  act_ref, logp_ref):
    # Hidden layer 0: relu(x @ W0 + b0)   (bf16 MXU operands, f32 accumulation)
    h = jnp.dot(x_ref[...], w0_ref[...], preferred_element_type=jnp.float32)
    h = jnp.maximum(h + b0_ref[...], 0.0)

    # Hidden layer 1: relu(h @ W1 + b1)
    h = jnp.dot(h.astype(jnp.bfloat16), w1_ref[...],
                preferred_element_type=jnp.float32)
    h = jnp.maximum(h + b1_ref[...], 0.0)
    hb = h.astype(jnp.bfloat16)

    # Heads: two lane-aligned matmuls.  loc, scale and eps all occupy lanes
    # 0:A, so the epilogue below is pure per-lane work (no slices / rolls /
    # concats / cross-lane moves).
    loc = jnp.tanh(jnp.dot(hb, wl_ref[...], preferred_element_type=jnp.float32)
                   + bl_ref[...]) * 2.0                    # output_loc_scaler = 2
    scale = jnp.maximum(jnp.dot(hb, ws_ref[...], preferred_element_type=jnp.float32)
                        + bs_ref[...], 0.0)                # relu

    # Reparameterized sample + log-prob (f32 epilogue).
    eps = eps_ref[...]
    sample = loc + scale * eps                              # Normal(loc, scale).rsample()
    half_log_2pi = jnp.float32(0.5 * math.log(2.0 * math.pi))
    # Normal(loc, scale).log_prob(loc + scale*eps) = -0.5*eps^2 - log(scale) - 0.5*log(2pi)
    logp = -0.5 * eps * eps - jnp.log(scale) - half_log_2pi

    # Hardtanh saturation to output_range = (-2, 2) + direct stores.
    act_ref[...] = jnp.clip(sample, -2.0, 2.0).astype(act_ref.dtype)
    logp_ref[...] = logp.astype(logp_ref.dtype)


# ----------------------------------------------------------------------------- #
# Wrapper: cast MXU operands to bf16, tile the batch, no pad/slice round trips.
# ----------------------------------------------------------------------------- #
def fc_actor_continuous(state, params, eps):
    B, S = state.shape
    A = params["wl"].shape[1]
    H0 = params["w0"].shape[1]
    H1 = params["w1"].shape[1]

    # bf16 MXU operands (halves HBM/VMEM traffic); biases stay f32 (added to
    # the f32 accumulator); eps stays f32 (epilogue math is f32).
    x_b = state.astype(jnp.bfloat16)
    w0 = params["w0"].astype(jnp.bfloat16)
    w1 = params["w1"].astype(jnp.bfloat16)
    wl = params["wl"].astype(jnp.bfloat16)
    ws = params["ws"].astype(jnp.bfloat16)
    b0 = params["b0"].astype(jnp.float32)
    b1 = params["b1"].astype(jnp.float32)
    bl = params["bl"].astype(jnp.float32)
    bs = params["bs"].astype(jnp.float32)
    eps_f = eps.astype(jnp.float32)

    # ---- batch tiling (no pad/slice HBM copies in the common case) ---------- #
    if B % 8 == 0:
        Bp = B
        tile_b = _choose_tile_b(B)
    elif B <= TILE_B_MAX:
        # Rare odd batch: a single block equal to the full array satisfies the
        # (8,128) block rule with no wrapper-side padding copy.
        Bp = B
        tile_b = B
    else:
        # Huge odd batch: pad up to a sublane multiple (copy is tiny vs. B).
        Bp = _round_up(B, 16)
        x_b = jnp.pad(x_b, ((0, Bp - B), (0, 0)))
        eps_f = jnp.pad(eps_f, ((0, Bp - B), (0, 0)))
        tile_b = _choose_tile_b(Bp)

    grid = (pl.cdiv(Bp, tile_b),)

    def batch_spec(cols):
        return pl.BlockSpec((tile_b, cols), lambda i: (i, 0))

    def const_spec(shape):  # weights/biases: same block every step -> VMEM-resident
        return pl.BlockSpec(shape, lambda i: (0, 0))

    cost = pl.CostEstimate(
        flops=2 * Bp * (S * H0 + H0 * H1 + 2 * H1 * A) + 10 * Bp * A,
        transcendentals=2 * Bp * A,  # tanh + log per output element
        bytes_accessed=(x_b.size * 2 + eps_f.size * 4
                        + (w0.size + w1.size + wl.size + ws.size) * 2
                        + (b0.size + b1.size + bl.size + bs.size) * 4
                        + 2 * B * A * 4),
    )

    action, log_probs = pl.pallas_call(
        _actor_kernel,
        out_shape=(jax.ShapeDtypeStruct((B, A), jnp.float32),
                   jax.ShapeDtypeStruct((B, A), jnp.float32)),
        grid=grid,
        in_specs=[
            batch_spec(S),                # state tile (bf16)
            const_spec((S, H0)),          # W0
            const_spec((1, H0)),          # b0
            const_spec((H0, H1)),         # W1
            const_spec((1, H1)),          # b1
            const_spec((H1, A)),          # Wl (loc head)
            const_spec((1, A)),           # bl
            const_spec((H1, A)),          # Ws (scale head)
            const_spec((1, A)),           # bs
            batch_spec(A),                # eps tile (f32)
        ],
        out_specs=[batch_spec(A), batch_spec(A)],
        compiler_params=pltpu.CompilerParams(
            # Shard batch tiles across the two TensorCores on v7x (>=2 grid
            # steps guaranteed by _choose_tile_b); no-op on v5e/v6e.
            dimension_semantics=("parallel",),
        ),
        cost_estimate=cost,
    )(x_b, w0, b0, w1, b1, wl, bl, ws, bs, eps_f)

    return action, log_probs


# ----------------------------------------------------------------------------- #
# Pure-JAX f32 reference (mirrors the torch module's forward given eps).
# ----------------------------------------------------------------------------- #
def fc_actor_continuous_ref(state, params, eps):
    h = jax.nn.relu(state @ params["w0"] + params["b0"])
    h = jax.nn.relu(h @ params["w1"] + params["b1"])
    loc = jnp.tanh(h @ params["wl"] + params["bl"]) * 2.0
    scale = jax.nn.relu(h @ params["ws"] + params["bs"])
    sample = loc + scale * eps
    logp = -0.5 * eps * eps - jnp.log(scale) - 0.5 * math.log(2.0 * math.pi)
    act = jnp.clip(sample, -2.0, 2.0)
    return act, logp, scale


# ----------------------------------------------------------------------------- #
# Deterministic parameter construction (same shapes nn.Linear would create,
# uniform(-1/sqrt(fan_in), 1/sqrt(fan_in)) like torch's default init).
# Weights stored [in_features, out_features] (transpose of torch storage).
# ----------------------------------------------------------------------------- #
def init_params(key, state_size, action_size, hidden_sizes=(128, 64)):
    sizes = [state_size] + list(hidden_sizes) + [action_size]

    def linear(key, fan_in, fan_out):
        kw, kb = jax.random.split(key)
        bound = 1.0 / math.sqrt(fan_in)
        w = jax.random.uniform(kw, (fan_in, fan_out), jnp.float32, -bound, bound)
        b = jax.random.uniform(kb, (1, fan_out), jnp.float32, -bound, bound)
        return w, b

    keys = jax.random.split(key, 4)
    w0, b0 = linear(keys[0], sizes[0], sizes[1])     # Linear(state, 128)
    w1, b1 = linear(keys[1], sizes[1], sizes[2])     # Linear(128, 64)
    wl, bl = linear(keys[2], sizes[2], sizes[3])     # loc head Linear(64, action)
    ws, bs = linear(keys[3], sizes[2], sizes[3])     # scale head Linear(64, action)
    return {"w0": w0, "b0": b0, "w1": w1, "b1": b1,
            "wl": wl, "bl": bl, "ws": ws, "bs": bs}


if __name__ == "__main__":
    state_size = 16
    action_size = 8
    batch = 8

    key = jax.random.PRNGKey(0)
    k_param, k_state, k_eps = jax.random.split(key, 3)

    params = init_params(k_param, state_size, action_size)
    state = jax.random.normal(k_state, (batch, state_size), jnp.float32)
    eps = jax.random.normal(k_eps, (batch, action_size), jnp.float32)

    action, log_probs = fc_actor_continuous(state, params, eps)
    jax.block_until_ready((action, log_probs))

    assert action.shape == (batch, action_size)
    assert log_probs.shape == (batch, action_size)
    # Saturation bound check (Hardtanh(-2, 2)) + finiteness of actions.
    assert bool(jnp.all(action <= 2.0)) and bool(jnp.all(action >= -2.0))
    assert bool(jnp.all(jnp.isfinite(action)))

    # Numerical check vs. pure-JAX f32 reference (bf16 MXU operands => loose tol).
    act_ref, logp_ref, scale_ref = fc_actor_continuous_ref(state, params, eps)
    assert float(jnp.max(jnp.abs(action - act_ref))) < 5e-2
    # Only compare log_prob away from the relu kink (scale ~ 0 -> divergent log),
    # which mirrors the reference module's degenerate Normal(loc, 0) corner case.
    safe = scale_ref > 0.1
    logp_err = jnp.where(safe, jnp.abs(log_probs - logp_ref), 0.0)
    assert float(jnp.max(logp_err)) < 1e-1

    print("KERNEL_OK")
</pallas_src>

<mosaic_0001>
module attributes {stable_mosaic.version = 11 : i64} {
  func.func @_actor_kernel(%arg0: i32, %arg1: memref<8x16xbf16, #tpu.memory_space<vmem>>, %arg2: memref<16x128xbf16, #tpu.memory_space<vmem>>, %arg3: memref<1x128xf32, #tpu.memory_space<vmem>>, %arg4: memref<128x64xbf16, #tpu.memory_space<vmem>>, %arg5: memref<1x64xf32, #tpu.memory_space<vmem>>, %arg6: memref<64x8xbf16, #tpu.memory_space<vmem>>, %arg7: memref<1x8xf32, #tpu.memory_space<vmem>>, %arg8: memref<64x8xbf16, #tpu.memory_space<vmem>>, %arg9: memref<1x8xf32, #tpu.memory_space<vmem>>, %arg10: memref<8x8xf32, #tpu.memory_space<vmem>>, %arg11: memref<8x8xf32, #tpu.memory_space<vmem>>, %arg12: memref<8x8xf32, #tpu.memory_space<vmem>>) attributes {dimension_semantics = [#tpu.dimension_semantics<parallel>], iteration_bounds = array<i64: 1>, scalar_prefetch = 0 : i64, scratch_operands = 0 : i64, tpu.core_type = #tpu.core_type<tc>, window_params = [{transform_indices = @transform_0, window_bounds = array<i64: 8, 16>}, {pipeline_mode = #tpu.pipeline_mode<synchronous>, transform_indices = @transform_1, window_bounds = array<i64: 16, 128>}, {pipeline_mode = #tpu.pipeline_mode<synchronous>, transform_indices = @transform_2, window_bounds = array<i64: 1, 128>}, {pipeline_mode = #tpu.pipeline_mode<synchronous>, transform_indices = @transform_3, window_bounds = array<i64: 128, 64>}, {pipeline_mode = #tpu.pipeline_mode<synchronous>, transform_indices = @transform_4, window_bounds = array<i64: 1, 64>}, {pipeline_mode = #tpu.pipeline_mode<synchronous>, transform_indices = @transform_5, window_bounds = array<i64: 64, 8>}, {pipeline_mode = #tpu.pipeline_mode<synchronous>, transform_indices = @transform_6, window_bounds = array<i64: 1, 8>}, {pipeline_mode = #tpu.pipeline_mode<synchronous>, transform_indices = @transform_7, window_bounds = array<i64: 64, 8>}, {pipeline_mode = #tpu.pipeline_mode<synchronous>, transform_indices = @transform_8, window_bounds = array<i64: 1, 8>}, {transform_indices = @transform_9, window_bounds = array<i64: 8, 8>}, {transform_indices = @transform_10, window_bounds = array<i64: 8, 8>}, {transform_indices = @transform_11, window_bounds = array<i64: 8, 8>}]} {
    %c0 = arith.constant 0 : index
    %c0_0 = arith.constant 0 : index
    %0 = vector.load %arg1[%c0, %c0_0] : memref<8x16xbf16, #tpu.memory_space<vmem>>, vector<8x16xbf16>
    %c0_1 = arith.constant 0 : index
    %c0_2 = arith.constant 0 : index
    %1 = vector.load %arg2[%c0_1, %c0_2] : memref<16x128xbf16, #tpu.memory_space<vmem>>, vector<16x128xbf16>
    %cst = arith.constant dense<0.000000e+00> : vector<8x128xf32>
    %2 = tpu.matmul %0, %1, %cst {dimension_numbers = #tpu.dot_dimension_numbers<[1], [0], [0], [1], [0, 0, 1, 1], [], []>} : vector<8x16xbf16>, vector<16x128xbf16>, vector<8x128xf32> -> vector<8x128xf32>
    %c0_3 = arith.constant 0 : index
    %c0_4 = arith.constant 0 : index
    %3 = vector.load %arg3[%c0_3, %c0_4] : memref<1x128xf32, #tpu.memory_space<vmem>>, vector<1x128xf32>
    %4 = vector.broadcast %3 : vector<1x128xf32> to vector<8x128xf32>
    %5 = arith.addf %2, %4 : vector<8x128xf32>
    %cst_5 = arith.constant 0.000000e+00 : f32
    %6 = vector.broadcast %cst_5 : f32 to vector<8x128xf32>
    %7 = arith.maximumf %5, %6 : vector<8x128xf32>
    %8 = arith.truncf %7 : vector<8x128xf32> to vector<8x128xbf16>
    %c0_6 = arith.constant 0 : index
    %c0_7 = arith.constant 0 : index
    %9 = vector.load %arg4[%c0_6, %c0_7] : memref<128x64xbf16, #tpu.memory_space<vmem>>, vector<128x64xbf16>
    %cst_8 = arith.constant dense<0.000000e+00> : vector<8x64xf32>
    %10 = tpu.matmul %8, %9, %cst_8 {dimension_numbers = #tpu.dot_dimension_numbers<[1], [0], [0], [1], [0, 0, 1, 1], [], []>} : vector<8x128xbf16>, vector<128x64xbf16>, vector<8x64xf32> -> vector<8x64xf32>
    %c0_9 = arith.constant 0 : index
    %c0_10 = arith.constant 0 : index
    %11 = vector.load %arg5[%c0_9, %c0_10] : memref<1x64xf32, #tpu.memory_space<vmem>>, vector<1x64xf32>
    %12 = vector.broadcast %11 : vector<1x64xf32> to vector<8x64xf32>
    %13 = arith.addf %10, %12 : vector<8x64xf32>
    %cst_11 = arith.constant 0.000000e+00 : f32
    %14 = vector.broadcast %cst_11 : f32 to vector<8x64xf32>
    %15 = arith.maximumf %13, %14 : vector<8x64xf32>
    %16 = arith.truncf %15 : vector<8x64xf32> to vector<8x64xbf16>
    %c0_12 = arith.constant 0 : index
    %c0_13 = arith.constant 0 : index
    %17 = vector.load %arg6[%c0_12, %c0_13] : memref<64x8xbf16, #tpu.memory_space<vmem>>, vector<64x8xbf16>
    %cst_14 = arith.constant dense<0.000000e+00> : vector<8x8xf32>
    %18 = tpu.matmul %16, %17, %cst_14 {dimension_numbers = #tpu.dot_dimension_numbers<[1], [0], [0], [1], [0, 0, 1, 1], [], []>} : vector<8x64xbf16>, vector<64x8xbf16>, vector<8x8xf32> -> vector<8x8xf32>
    %c0_15 = arith.constant 0 : index
    %c0_16 = arith.constant 0 : index
    %19 = vector.load %arg7[%c0_15, %c0_16] : memref<1x8xf32, #tpu.memory_space<vmem>>, vector<1x8xf32>
    %20 = vector.broadcast %19 : vector<1x8xf32> to vector<8x8xf32>
    %21 = arith.addf %18, %20 : vector<8x8xf32>
    %22 = math.tanh %21 : vector<8x8xf32>
    %cst_17 = arith.constant 2.000000e+00 : f32
    %23 = vector.broadcast %cst_17 : f32 to vector<8x8xf32>
    %24 = arith.mulf %22, %23 : vector<8x8xf32>
    %c0_18 = arith.constant 0 : index
    %c0_19 = arith.constant 0 : index
    %25 = vector.load %arg8[%c0_18, %c0_19] : memref<64x8xbf16, #tpu.memory_space<vmem>>, vector<64x8xbf16>
    %cst_20 = arith.constant dense<0.000000e+00> : vector<8x8xf32>
    %26 = tpu.matmul %16, %25, %cst_20 {dimension_numbers = #tpu.dot_dimension_numbers<[1], [0], [0], [1], [0, 0, 1, 1], [], []>} : vector<8x64xbf16>, vector<64x8xbf16>, vector<8x8xf32> -> vector<8x8xf32>
    %c0_21 = arith.constant 0 : index
    %c0_22 = arith.constant 0 : index
    %27 = vector.load %arg9[%c0_21, %c0_22] : memref<1x8xf32, #tpu.memory_space<vmem>>, vector<1x8xf32>
    %28 = vector.broadcast %27 : vector<1x8xf32> to vector<8x8xf32>
    %29 = arith.addf %26, %28 : vector<8x8xf32>
    %cst_23 = arith.constant 0.000000e+00 : f32
    %30 = vector.broadcast %cst_23 : f32 to vector<8x8xf32>
    %31 = arith.maximumf %29, %30 : vector<8x8xf32>
    %c0_24 = arith.constant 0 : index
    %c0_25 = arith.constant 0 : index
    %32 = vector.load %arg10[%c0_24, %c0_25] : memref<8x8xf32, #tpu.memory_space<vmem>>, vector<8x8xf32>
    %33 = arith.mulf %31, %32 : vector<8x8xf32>
    %34 = arith.addf %24, %33 : vector<8x8xf32>
    %cst_26 = arith.constant -5.000000e-01 : f32
    %35 = vector.broadcast %cst_26 : f32 to vector<8x8xf32>
    %36 = arith.mulf %35, %32 : vector<8x8xf32>
    %37 = arith.mulf %36, %32 : vector<8x8xf32>
    %38 = math.log %31 : vector<8x8xf32>
    %39 = arith.subf %37, %38 : vector<8x8xf32>
    %cst_27 = arith.constant 0.918938517 : f32
    %40 = vector.broadcast %cst_27 : f32 to vector<8x8xf32>
    %41 = arith.subf %39, %40 : vector<8x8xf32>
    %cst_28 = arith.constant -2.000000e+00 : f32
    %cst_29 = arith.constant 2.000000e+00 : f32
    %42 = vector.broadcast %cst_28 : f32 to vector<8x8xf32>
    %43 = arith.maximumf %42, %34 : vector<8x8xf32>
    %44 = vector.broadcast %cst_29 : f32 to vector<8x8xf32>
    %45 = arith.minimumf %44, %43 : vector<8x8xf32>
    %c0_30 = arith.constant 0 : index
    %c0_31 = arith.constant 0 : index
    %46 = vector.load %arg11[%c0_30, %c0_31] : memref<8x8xf32, #tpu.memory_space<vmem>>, vector<8x8xf32>
    tpu.vector_store %arg11[%c0_30, %c0_31], %45 {strides = array<i32>} : memref<8x8xf32, #tpu.memory_space<vmem>>, vector<8x8xf32>,
    %c0_32 = arith.constant 0 : index
    %c0_33 = arith.constant 0 : index
    %47 = vector.load %arg12[%c0_32, %c0_33] : memref<8x8xf32, #tpu.memory_space<vmem>>, vector<8x8xf32>
    tpu.vector_store %arg12[%c0_32, %c0_33], %41 {strides = array<i32>} : memref<8x8xf32, #tpu.memory_space<vmem>>, vector<8x8xf32>,
    return
  }
  func.func @transform_0(%arg0: i32) -> (i32, i32) {
    %c0_i32 = arith.constant 0 : i32
    %c0_i32_0 = arith.constant 0 : i32
    return %arg0, %c0_i32 : i32, i32
  }
  func.func @transform_1(%arg0: i32) -> (i32, i32) {
    %c0_i32 = arith.constant 0 : i32
    %c0_i32_0 = arith.constant 0 : i32
    %c0_i32_1 = arith.constant 0 : i32
    return %c0_i32, %c0_i32_0 : i32, i32
  }
  func.func @transform_2(%arg0: i32) -> (i32, i32) {
    %c0_i32 = arith.constant 0 : i32
    %c0_i32_0 = arith.constant 0 : i32
    %c0_i32_1 = arith.constant 0 : i32
    return %c0_i32, %c0_i32_0 : i32, i32
  }
  func.func @transform_3(%arg0: i32) -> (i32, i32) {
    %c0_i32 = arith.constant 0 : i32
    %c0_i32_0 = arith.constant 0 : i32
    %c0_i32_1 = arith.constant 0 : i32
    return %c0_i32, %c0_i32_0 : i32, i32
  }
  func.func @transform_4(%arg0: i32) -> (i32, i32) {
    %c0_i32 = arith.constant 0 : i32
    %c0_i32_0 = arith.constant 0 : i32
    %c0_i32_1 = arith.constant 0 : i32
    return %c0_i32, %c0_i32_0 : i32, i32
  }
  func.func @transform_5(%arg0: i32) -> (i32, i32) {
    %c0_i32 = arith.constant 0 : i32
    %c0_i32_0 = arith.constant 0 : i32
    %c0_i32_1 = arith.constant 0 : i32
    return %c0_i32, %c0_i32_0 : i32, i32
  }
  func.func @transform_6(%arg0: i32) -> (i32, i32) {
    %c0_i32 = arith.constant 0 : i32
    %c0_i32_0 = arith.constant 0 : i32
    %c0_i32_1 = arith.constant 0 : i32
    return %c0_i32, %c0_i32_0 : i32, i32
  }
  func.func @transform_7(%arg0: i32) -> (i32, i32) {
    %c0_i32 = arith.constant 0 : i32
    %c0_i32_0 = arith.constant 0 : i32
    %c0_i32_1 = arith.constant 0 : i32
    return %c0_i32, %c0_i32_0 : i32, i32
  }
  func.func @transform_8(%arg0: i32) -> (i32, i32) {
    %c0_i32 = arith.constant 0 : i32
    %c0_i32_0 = arith.constant 0 : i32
    %c0_i32_1 = arith.constant 0 : i32
    return %c0_i32, %c0_i32_0 : i32, i32
  }
  func.func @transform_9(%arg0: i32) -> (i32, i32) {
    %c0_i32 = arith.constant 0 : i32
    %c0_i32_0 = arith.constant 0 : i32
    return %arg0, %c0_i32 : i32, i32
  }
  func.func @transform_10(%arg0: i32) -> (i32, i32) {
    %c0_i32 = arith.constant 0 : i32
    %c0_i32_0 = arith.constant 0 : i32
    return %arg0, %c0_i32 : i32, i32
  }
  func.func @transform_11(%arg0: i32) -> (i32, i32) {
    %c0_i32 = arith.constant 0 : i32
    %c0_i32_0 = arith.constant 0 : i32
    return %arg0, %c0_i32 : i32, i32
  }
}

</mosaic_0001>

<bundles_post_ra>
// kernel: tpu_custom_call.1
= control target key start
LH: loop header
LB: loop body
LE: loop exit
PB: predicated region body
PF: predicated region fallthrough
CT: control target
= control target key end

     0   :  { %17 = vsyncpa [#allocation3], 0  ;;  %v592_v1 = vmov 0.0   ;;  %vm593_vm0 = vmmov 0   ;;  %vm56_vm1 = vcmask 130048   ;;  %s776_s0 = inlined_call_operand.vmem [shape: bf16[8,16], index: 0, kind: input, shape index: {}]   ;;  %s777_s1 = inlined_call_operand.vmem [shape: bf16[16,128], index: 1, kind: input, shape index: {}]   ;;  %s778_s2 = inlined_call_operand.vmem [shape: f32[1,128], index: 2, kind: input, shape index: {}]   ;;  %s779_s3 = inlined_call_operand.vmem [shape: bf16[128,64], index: 3, kind: input, shape index: {}]   ;;  %s780_s4 = inlined_call_operand.vmem [shape: f32[1,64], index: 4, kind: input, shape index: {}]   ;;  %s781_s5 = inlined_call_operand.vmem [shape: bf16[64,8], index: 5, kind: input, shape index: {}]   ;;  %s782_s6 = inlined_call_operand.vmem [shape: f32[1,8], index: 6, kind: input, shape index: {}]   ;;  %s783_s7 = inlined_call_operand.vmem [shape: bf16[64,8], index: 7, kind: input, shape index: {}]   ;;  %s784_s8 = inlined_call_operand.vmem [shape: f32[1,8], index: 8, kind: input, shape index: {}]   ;;  %s785_s9 = inlined_call_operand.vmem [shape: f32[8,8], index: 9, kind: input, shape index: {}]   ;;  %s786_s10 = inlined_call_operand.hbm [shape: f32[8,8], index: 10, kind: output, shape index: {0}]   ;;  %s787_s11 = inlined_call_operand.hbm [shape: f32[8,8], index: 11, kind: output, shape index: {1}]  }
   0x1   :  { %v523_v0 = vld [vmem:[%s777_s1] sm:$0xff]   ;;  %469 = vmatprep.subr.bf16.mxu0 %v592_v1  ;;  %475 = vmatprep.subr.bf16.mxu1 %v592_v1  ;;  %v525_v4 = vld [vmem:[%s779_s3 + $0x8] sm:$0xff]   ;;  %v526_v5 = vld [vmem:[%s779_s3 + $0x10] sm:$0xff]  }
   0x2   :  { %v40_v2 = vld [vmem:[%s776_s0] sm:$0xf]  ;;  %470 = vmatpush3.bf16.msra.mxu0 %v523_v0  ;;  %471 = vmatprep.mubr.msk.bf16.mxu0 %vm593_vm0, %v592_v1  ;;  %v527_v6 = vld [vmem:[%s779_s3 + $0x18] sm:$0xff]  }
   0x3   :  { %v524_v3 = vld [vmem:[%s779_s3] sm:$0xff]   ;;  %491 = vmatprep.mubr.msk.bf16.mxu1 %vm593_vm0, %v592_v1  ;;  %495 = vmatprep.subr.bf16.mxu0 %v592_v1 }
   0x4   :  { %476 = vmatpush3.bf16.msra.mxu1 %v524_v3 }
   0x5   :  { %472 = vmatmul.mubr.msk.bf16.vlgmr.msra.gmra.mrb[0].mxu0 %vm56_vm1, %v40_v2  ;;  %477 = vmatprep.subr.bf16.mxu1 %v592_v1 }
   0x6   :  { %503 = vmatprep.mubr.msk.bf16.mxu0 %vm593_vm0, %v592_v1 }
   0x8   :  { %478 = vmatpush3.bf16.msra.mxu1 %v525_v4 }
   0x9   :  { %479 = vmatprep.subr.bf16.mxu1 %v592_v1 }
   0xc   :  { %480 = vmatpush3.bf16.msra.mxu1 %v526_v5 }
   0xd   :  { %481 = vmatprep.subr.bf16.mxu1 %v592_v1 }
   0xe   :  { %18 = vsyncpa [#allocation5], 0  ;;  %v528_v7 = vld [vmem:[%s779_s3 + $0x20] sm:$0xff]   ;;  %v529_v8 = vld [vmem:[%s779_s3 + $0x28] sm:$0xff]   ;;  %vm254_vm2 = vcmask 523264   ;;  %vm391_vm3 = vcmask 64512  }
   0xf   :  { %v530_v9 = vld [vmem:[%s779_s3 + $0x30] sm:$0xff]   ;;  %v531_v10 = vld [vmem:[%s779_s3 + $0x38] sm:$0xff]   ;;  %v532_v11 = vld [vmem:[%s781_s5] sm:$0xff]  }
  0x10   :  { %482 = vmatpush3.bf16.msra.mxu1 %v527_v6  ;;  %496 = vmatpush3.bf16.msra.mxu0 %v532_v11  ;;  %v533_v12 = vld [vmem:[%s781_s5 + $0x8] sm:$0xff]   ;;  %v534_v13 = vld [vmem:[%s781_s5 + $0x10] sm:$0xff]   ;;  %v422_v14 = vld [vmem:[%s778_s2] ss:$0 sm:$0xff] }
  0x11   :  { %483 = vmatprep.subr.bf16.mxu1 %v592_v1  ;;  %497 = vmatprep.subr.bf16.mxu0 %v592_v1  ;;  %v535_v22 = vld [vmem:[%s781_s5 + $0x18] sm:$0xff]   ;;  %v425_v23 = vld [vmem:[%s780_s4] ss:$0 sm:$0xff]  ;;  %v537_v32 = vld [vmem:[%s783_s7 + $0x8] sm:$0xff]  }
  0x12   :  { %v536_v30 = vld [vmem:[%s783_s7] sm:$0xff]   ;;  %v538_v33 = vld [vmem:[%s783_s7 + $0x10] sm:$0xff]   ;;  %v539_v34 = vld [vmem:[%s783_s7 + $0x18] sm:$0xff]  }
  0x13   :  { %v434_v36 = vld [vmem:[%s782_s6] ss:$0 sm:$0xff]  ;;  %s594_s6 = smov [#allocation2]  }
  0x14   :  { %484 = vmatpush3.bf16.msra.mxu1 %v528_v7  ;;  %498 = vmatpush3.bf16.msra.mxu0 %v533_v12  ;;  %v440_v41 = vld [vmem:[%s784_s8] ss:$0 sm:$0xff]  ;;  %s400_s16 = sshll.u32 %s594_s6, 4  ;;  %s401_s16 = int_to_ptr.vmem [resolvable:$true] %s400_s16 }
  0x15   :  { %485 = vmatprep.subr.bf16.mxu1 %v592_v1  ;;  %499 = vmatprep.subr.bf16.mxu0 %v592_v1  ;;  %v380_v46 = vld [vmem:[%s785_s9] sm:$0xff]  ;;  %s544_s8 = scalar_lea.vmem %s401_s16, 128  ;;  %p549_p1 = scmp.lt.s32.totalorder %s401_s16, %s401_s16 }
  0x16   :  { %v383_v54 = vmul.f32 -0.5, %v380_v46  ;;  %p545_p0 = scmp.ne.s32.totalorder %s401_s16, %s544_s8  ;;  %p550_p2 = scmp.lt.s32.totalorder %s544_s8, %s544_s8 }
  0x18   :  { %486 = vmatpush3.bf16.msra.mxu1 %v529_v8  ;;  %500 = vmatpush3.bf16.msra.mxu0 %v534_v13  ;;  %p551_p3 = por %p550_p2, %p549_p1 }
  0x19   :  { %487 = vmatprep.subr.bf16.mxu1 %v592_v1  ;;  %501 = vmatprep.subr.bf16.mxu0 %v592_v1 }
  0x1a   :  { %p552_p4 = pnand %p551_p3, %p545_p0 }
  0x1c   :  { %488 = vmatpush3.bf16.msra.mxu1 %v530_v9  ;;  %502 = vmatpush3.bf16.msra.mxu0 %v535_v22 }
  0x1d   :  { %489 = vmatprep.subr.bf16.mxu1 %v592_v1  ;;  %507 = vmatprep.subr.bf16.mxu0 %v592_v1 }
  0x20   :  { %490 = vmatpush3.bf16.msra.mxu1 %v531_v10 }
  0xd8   :  { %v94_v15 = vpop.f32.mrb[0].mxu0 }
  0xd9   :  { %v95_v16 = vadd.f32 %v422_v14, %v94_v15  ;;  %v473_v17 = vpop.f32.mrb[1].mxu0 }
  0xda   :  { %v97_v18 = vpop.f32.mrb[2].mxu0 }
  0xdb   :  { %v100_v19 = vmax.f32 %v95_v16, 0.0  ;;  %v474_v20 = vpop.f32.mrb[3].mxu0 }
  0xdd   :  { %v101_v21 = vpack.c.bf16 %v100_v19, %v100_v19 }
  0xdf   :  { %492 = vmatmul.mubr.bf16.vlgmr.msra.gmra.mrb[0].mxu1 %v101_v21 }
 0x1b2   :  { %v207_v24 = vpop.f32.mrb[0].mxu1 }
 0x1b3   :  { %v208_v25 = vadd.f32 %v425_v23, %v207_v24  ;;  %v493_v26 = vpop.f32.mrb[1].mxu1 }
 0x1b4   :  { %v210_v27 = vpop.f32.mrb[2].mxu1 }
 0x1b5   :  { %v213_v28 = vmax.f32 %v208_v25, 0.0  ;;  %v494_v29 = vpop.f32.mrb[3].mxu1 }
 0x1b7   :  { %v214_v31 = vpack.c.bf16 %v213_v28, %v213_v28 }
 0x1b9   :  { %504 = vmatmul.mubr.msk.bf16.vlgmr.msra.gmra.mrb[4].mxu0 %vm254_vm2, %v214_v31 }
 0x1ba   :  { %508 = vmatpush3.bf16.msra.mxu0 %v536_v30  ;;  %515 = vmatprep.mubr.msk.bf16.mxu0 %vm593_vm0, %v592_v1 }
 0x1bb   :  { %509 = vmatprep.subr.bf16.mxu0 %v592_v1 }
 0x1be   :  { %510 = vmatpush3.bf16.msra.mxu0 %v537_v32 }
 0x1bf   :  { %511 = vmatprep.subr.bf16.mxu0 %v592_v1 }
 0x1c2   :  { %512 = vmatpush3.bf16.msra.mxu0 %v538_v33 }
 0x1c3   :  { %513 = vmatprep.subr.bf16.mxu0 %v592_v1 }
 0x1c6   :  { %514 = vmatpush3.bf16.msra.mxu0 %v539_v34 }
 0x1c9   :  { %516 = vmatmul.mubr.msk.bf16.vlgmr.msra.gmra.mrb[8].mxu0 %vm254_vm2, %v214_v31 }
 0x28c   :  { %v292_v35 = vpop.f32.mrb[4].mxu0 }
 0x28d   :  { %v505_v37 = vpop.f32.mrb[5].mxu0  ;;  %v293_v40 = vadd.f32 %v434_v36, %v292_v35 }
 0x28e   :  { %v295_v38 = vpop.f32.mrb[6].mxu0 }
 0x28f   :  { %v506_v39 = vpop.f32.mrb[7].mxu0  ;;  %540 = vtanh.f32 %v293_v40 }
 0x299   :  { %v541_v45 = vpop.eup %540 }
 0x29a   :  { %v299_v50 = vmul.f32 2.0, %v541_v45 }
 0x29c   :  { %v373_v42 = vpop.f32.mrb[8].mxu0 }
 0x29d   :  { %v374_v43 = vadd.f32 %v440_v41, %v373_v42  ;;  %v517_v44 = vpop.f32.mrb[9].mxu0 }
 0x29e   :  { %v376_v47 = vpop.f32.mrb[10].mxu0 }
 0x29f   :  { %v379_v48 = vmax.f32 %v374_v43, 0.0  ;;  %v518_v49 = vpop.f32.mrb[11].mxu0 }
 0x2a1   :  { %v381_v51 = vmul.f32 %v380_v46, %v379_v48  ;;  %542 = vlog2.f32 %v379_v48 }
 0x2a3   :  { %v382_v52 = vadd.f32 %v381_v51, %v299_v50 }
 0x2a5   :  { %v447_v53 = vclamps-f32 %v382_v52, 2.0 }
 0x2a7   :  { %392 = vst.msk [vmem:[#allocation2] sm:$0xff] %vm391_vm3, %v447_v53 }
 0x2a8   :  { %555 = shalt.err (!%p552_p4)
}
 0x2a9   :  { %s556_s18 = scalar_lea.hbm %s786_s10, 128 }
 0x2aa   :  { %p557_p5 = scmp.ne.s32.totalorder %s786_s10, %s556_s18  ;;  %p560_p6 = scmp.lt.u32.totalorder %s556_s18, %s786_s10 }
 0x2ac   :  { %p562_p7 = pnand %p560_p6, %p557_p5 }
 0x2ae   :  { %565 = shalt.err (!%p562_p7)
}
 0x2af   :  { %403 = dma.vmem_to_hbm [thread:$0]  %s401_s16, 128, %s786_s10, [#allocation3]   ;;  %v384_v55 = vmul.f32 %v383_v54, %v380_v46  ;;  %v543_v56 = vpop.eup %542 }
 0x2b0   :  { %v386_v57 = vmul.f32 0.6931472, %v543_v56  ;;  %s595_s0 = smov [#allocation4]  }
 0x2b1   :  { %s410_s23 = sshll.u32 %s595_s0, 4  ;;  %s411_s23 = int_to_ptr.vmem [resolvable:$true] %s410_s23 }
 0x2b2   :  { %v387_v58 = vsub.f32 %v384_v55, %v386_v57  ;;  %s566_s24 = scalar_lea.vmem %s411_s23, 128  ;;  %p571_p9 = scmp.lt.s32.totalorder %s411_s23, %s411_s23 }
 0x2b3   :  { %p567_p8 = scmp.ne.s32.totalorder %s411_s23, %s566_s24  ;;  %p572_p10 = scmp.lt.s32.totalorder %s566_s24, %s566_s24 }
 0x2b4   :  { %v446_v59 = vadd.f32 -0.9189385, %v387_v58 }
 0x2b5   :  { %p573_p11 = por %p572_p10, %p571_p9 }
 0x2b6   :  { %393 = vst.msk [vmem:[#allocation4] sm:$0xff] %vm391_vm3, %v446_v59 }
 0x2b7   :  { %p574_p12 = pnand %p573_p11, %p567_p8 }
 0x2b9   :  { %577 = shalt.err (!%p574_p12)
}
 0x2ba   :  { %s578_s10 = scalar_lea.hbm %s787_s11, 128 }
 0x2bb   :  { %p579_p13 = scmp.ne.s32.totalorder %s787_s11, %s578_s10  ;;  %p582_p0 = scmp.lt.u32.totalorder %s578_s10, %s787_s11 }
 0x2bd   :  { %p584_p1 = pnand %p582_p0, %p579_p13 }
 0x2bf   :  { %587 = shalt.err (!%p584_p1)
}
 0x2c0   :  { %413 = dma.vmem_to_hbm [thread:$0]  %s411_s23, 128, %s787_s11, [#allocation5]  }
 0x2c1   :  { %588 = dma.done.wait [#allocation3], 128  }
 0x2c2   :  { %589 = vsyncadd [#allocation3], 4294967168 }
 0x2c3   :  { %590 = dma.done.wait [#allocation5], 128  }
 0x2c4   :  { %591 = vsyncadd [#allocation5], 4294967168 }
 0x2c5   :  { %420 = vsyncpa [#allocation3], 1 }
 0x2c6   :  { %421 = vsyncpa [#allocation5], 1 }

</bundles_post_ra>
